<compile_context>
chip_gen: v6e
topology: v6e:2x2x1
jax: 0.10.0
libtpu: 0.0.40
codegen_flags: <defaults>
</compile_context>

<pallas_src>
import functools

import jax
import jax.numpy as jnp
import numpy as np
from jax.experimental import pallas as pl
from jax.experimental.pallas import tpu as pltpu


_ACTIVATIONS = {
    "tanh": jnp.tanh,
    "relu": lambda x: jnp.maximum(x, 0.0),
    "gelu": jax.nn.gelu,
    "linear": lambda x: x,
}


def _round_up(n, m):
    return ((n + m - 1) // m) * m


def _vmem_capacity_bytes():
    try:
        return int(pltpu.get_tpu_info().vmem_capacity_bytes)
    except Exception:
        return 64 << 20  # conservative fallback (v7x per-TensorCore VMEM)


def _vmem_bytes_estimate(tb, d, h_pad, c):
    """Rough VMEM footprint for one grid step (weights single-buffered, I/O double-buffered)."""
    c_vmem = _round_up(c, 128)
    d_vmem = _round_up(d, 128)
    weights = d * h_pad * 2 + h_pad * c_vmem * 2 + 8 * h_pad * 4 + 8 * c_vmem * 4
    io = 2 * tb * d_vmem * 4 + 2 * tb * c_vmem * 4          # double-buffered x / out tiles
    work = tb * d_vmem * 2 + 2 * tb * h_pad * 4 + tb * c_vmem * 4
    return int(1.25 * (weights + io + work))


def prepare_classification_head_params(params):
    """One-time weight prep (hoisted out of the per-call path).

    Expects weights stored transposed w.r.t. nn.Linear: w1=[input_dim, inner_dim],
    b1=[1, inner_dim], w2=[inner_dim, num_classes], b2=[1, num_classes].

    Pads inner_dim to a multiple of 128 (exact: the padded w2 rows are zero, so padded
    hidden columns never contribute regardless of the activation) and casts the matmul
    operands to bf16; biases stay f32.
    """
    D, H = params["w1"].shape
    H2, C = params["w2"].shape
    assert H2 == H, "w1/w2 inner dims must match"
    H_pad = _round_up(H, 128)
    bf16, f32 = jnp.bfloat16, jnp.float32
    w1 = jnp.pad(params["w1"].astype(f32), ((0, 0), (0, H_pad - H))).astype(bf16)
    b1 = jnp.pad(params["b1"].astype(f32).reshape(1, H), ((0, 0), (0, H_pad - H)))
    w2 = jnp.pad(params["w2"].astype(f32), ((0, H_pad - H), (0, 0))).astype(bf16)
    b2 = params["b2"].astype(f32).reshape(1, C)
    return {"w1": w1, "b1": b1, "w2": w2, "b2": b2,
            "input_dim": D, "inner_dim": H, "num_classes": C}


def _cls_head_kernel(x_ref, w1_ref, b1_ref, w2_ref, b2_ref, out_ref, *, activation):
    """One batch tile: x[TB, D] -> out[TB, C]."""
    # Dropout is identity at inference time.
    # TODO(synk): train-mode dropout (pltpu.prng_* masking) not implemented; eval() forward only.
    x = x_ref[...].astype(jnp.bfloat16)                               # cast in VMEM (no HBM cost)

    # dense: Linear(input_dim -> inner_dim) + activation (bf16 MXU, f32 accumulate)
    h = jnp.dot(x, w1_ref[...], preferred_element_type=jnp.float32)   # [TB, H_pad] f32
    h = _ACTIVATIONS[activation](h + b1_ref[...])

    # out_proj: Linear(inner_dim -> num_classes)
    y = jnp.dot(h.astype(jnp.bfloat16), w2_ref[...],
                preferred_element_type=jnp.float32)                   # [TB, C] f32
    out_ref[...] = (y + b2_ref[...]).astype(out_ref.dtype)


def classification_head_forward(features, prepared, *, activation="tanh", block_b=512):
    """features: [B, input_dim] (any float dtype).  `prepared` from prepare_classification_head_params.

    Returns [B, num_classes] float32.
    """
    B, D = features.shape
    assert D == prepared["input_dim"]
    H_pad = prepared["w1"].shape[1]
    C = prepared["num_classes"]

    budget = int(0.85 * _vmem_capacity_bytes())

    # Batch tile: as large as fits, multiple of 8 (sublane); >=2 grid steps when B > 8 so
    # a 2-TensorCore chip (v7x) can shard the parallel batch axis across cores.
    TB = min(block_b, _round_up(B, 8))
    if B > 8:
        TB = min(TB, _round_up(-(-B // 2), 8))
    while TB > 8 and _vmem_bytes_estimate(TB, D, H_pad, C) > budget:
        TB = max(8, _round_up(TB // 2, 8))
    # TODO(synk): if the resident [D, H_pad] weight alone exceeds the VMEM budget (very large
    # input_dim on v7x), add a K-reduction grid axis + f32 accumulator scratch instead of
    # shrinking TB further.

    est = _vmem_bytes_estimate(TB, D, H_pad, C)
    vmem_limit = int(min(budget, max(2 * est, 8 << 20)))

    grid = (-(-B // TB),)  # ragged last batch block is masked by Pallas; no pad / no slice

    kernel = functools.partial(_cls_head_kernel, activation=activation)
    resident = pl.Buffered(1)  # constant index_map blocks: single-buffer the VMEM residents

    out = pl.pallas_call(
        kernel,
        out_shape=jax.ShapeDtypeStruct((B, C), jnp.float32),
        grid=grid,
        in_specs=[
            pl.BlockSpec((TB, D), lambda i: (i, 0)),                                # features
            pl.BlockSpec((D, H_pad), lambda i: (0, 0), pipeline_mode=resident),     # dense W
            pl.BlockSpec((1, H_pad), lambda i: (0, 0), pipeline_mode=resident),     # dense b
            pl.BlockSpec((H_pad, C), lambda i: (0, 0), pipeline_mode=resident),     # out_proj W
            pl.BlockSpec((1, C), lambda i: (0, 0), pipeline_mode=resident),         # out_proj b
        ],
        out_specs=pl.BlockSpec((TB, C), lambda i: (i, 0)),
        compiler_params=pltpu.CompilerParams(
            dimension_semantics=("parallel",),
            vmem_limit_bytes=vmem_limit,
        ),
    )(features, prepared["w1"], prepared["b1"], prepared["w2"], prepared["b2"])

    return out


def reference_forward(features, params, activation="tanh"):
    """Pure-JAX f32 reference mirroring the PyTorch forward (eval mode: dropout = identity)."""
    x = features.astype(jnp.float32)
    h = _ACTIVATIONS[activation](x @ params["w1"] + params["b1"][0])
    return h @ params["w2"] + params["b2"][0]


if __name__ == "__main__":
    B, INPUT_DIM, INNER_DIM, NUM_CLASSES = 8, 32, 32, 4
    ACT = "tanh"

    key = jax.random.PRNGKey(0)
    k = jax.random.split(key, 5)
    raw_params = {
        # nn.Linear(input_dim, inner_dim): weight [inner, input] -> stored transposed [input, inner]
        "w1": jax.random.normal(k[0], (INPUT_DIM, INNER_DIM), jnp.float32) * 0.1,
        "b1": jax.random.normal(k[1], (1, INNER_DIM), jnp.float32) * 0.1,
        # nn.Linear(inner_dim, num_classes): stored transposed [inner, classes]
        "w2": jax.random.normal(k[2], (INNER_DIM, NUM_CLASSES), jnp.float32) * 0.1,
        "b2": jax.random.normal(k[3], (1, NUM_CLASSES), jnp.float32) * 0.1,
    }
    features = jax.random.normal(k[4], (B, INPUT_DIM), jnp.float32)

    prepared = prepare_classification_head_params(raw_params)   # one-time pad + bf16 cast
    out = classification_head_forward(features, prepared, activation=ACT)
    out = jax.block_until_ready(out)

    ref = reference_forward(features, raw_params, activation=ACT)
    # bf16 MXU inputs with f32 accumulation: loosen tolerance accordingly.
    np.testing.assert_allclose(np.asarray(out), np.asarray(ref), rtol=5e-2, atol=5e-2)
    print("KERNEL_OK")
</pallas_src>

<mosaic_0001>
module attributes {stable_mosaic.version = 11 : i64} {
  func.func @_cls_head_kernel(%arg0: i32, %arg1: memref<8x32xf32, #tpu.memory_space<vmem>>, %arg2: memref<32x128xbf16, #tpu.memory_space<vmem>>, %arg3: memref<1x128xf32, #tpu.memory_space<vmem>>, %arg4: memref<128x4xbf16, #tpu.memory_space<vmem>>, %arg5: memref<1x4xf32, #tpu.memory_space<vmem>>, %arg6: memref<8x4xf32, #tpu.memory_space<vmem>>) attributes {dimension_semantics = [#tpu.dimension_semantics<parallel>], iteration_bounds = array<i64: 1>, scalar_prefetch = 0 : i64, scratch_operands = 0 : i64, tpu.core_type = #tpu.core_type<tc>, window_params = [{transform_indices = @transform_0, window_bounds = array<i64: 8, 32>}, {pipeline_mode = #tpu.pipeline_mode<synchronous>, transform_indices = @transform_1, window_bounds = array<i64: 32, 128>}, {pipeline_mode = #tpu.pipeline_mode<synchronous>, transform_indices = @transform_2, window_bounds = array<i64: 1, 128>}, {pipeline_mode = #tpu.pipeline_mode<synchronous>, transform_indices = @transform_3, window_bounds = array<i64: 128, 4>}, {pipeline_mode = #tpu.pipeline_mode<synchronous>, transform_indices = @transform_4, window_bounds = array<i64: 1, 4>}, {transform_indices = @transform_5, window_bounds = array<i64: 8, 4>}]} {
    %c0 = arith.constant 0 : index
    %c0_0 = arith.constant 0 : index
    %0 = vector.load %arg1[%c0, %c0_0] : memref<8x32xf32, #tpu.memory_space<vmem>>, vector<8x32xf32>
    %1 = arith.truncf %0 : vector<8x32xf32> to vector<8x32xbf16>
    %c0_1 = arith.constant 0 : index
    %c0_2 = arith.constant 0 : index
    %2 = vector.load %arg2[%c0_1, %c0_2] : memref<32x128xbf16, #tpu.memory_space<vmem>>, vector<32x128xbf16>
    %cst = arith.constant dense<0.000000e+00> : vector<8x128xf32>
    %3 = tpu.matmul %1, %2, %cst {dimension_numbers = #tpu.dot_dimension_numbers<[1], [0], [0], [1], [0, 0, 1, 1], [], []>} : vector<8x32xbf16>, vector<32x128xbf16>, vector<8x128xf32> -> vector<8x128xf32>
    %c0_3 = arith.constant 0 : index
    %c0_4 = arith.constant 0 : index
    %4 = vector.load %arg3[%c0_3, %c0_4] : memref<1x128xf32, #tpu.memory_space<vmem>>, vector<1x128xf32>
    %5 = vector.broadcast %4 : vector<1x128xf32> to vector<8x128xf32>
    %6 = arith.addf %3, %5 : vector<8x128xf32>
    %7 = math.tanh %6 : vector<8x128xf32>
    %8 = arith.truncf %7 : vector<8x128xf32> to vector<8x128xbf16>
    %c0_5 = arith.constant 0 : index
    %c0_6 = arith.constant 0 : index
    %9 = vector.load %arg4[%c0_5, %c0_6] : memref<128x4xbf16, #tpu.memory_space<vmem>>, vector<128x4xbf16>
    %cst_7 = arith.constant dense<0.000000e+00> : vector<8x4xf32>
    %10 = tpu.matmul %8, %9, %cst_7 {dimension_numbers = #tpu.dot_dimension_numbers<[1], [0], [0], [1], [0, 0, 1, 1], [], []>} : vector<8x128xbf16>, vector<128x4xbf16>, vector<8x4xf32> -> vector<8x4xf32>
    %c0_8 = arith.constant 0 : index
    %c0_9 = arith.constant 0 : index
    %11 = vector.load %arg5[%c0_8, %c0_9] : memref<1x4xf32, #tpu.memory_space<vmem>>, vector<1x4xf32>
    %12 = vector.broadcast %11 : vector<1x4xf32> to vector<8x4xf32>
    %13 = arith.addf %10, %12 : vector<8x4xf32>
    %c0_10 = arith.constant 0 : index
    %c0_11 = arith.constant 0 : index
    %14 = vector.load %arg6[%c0_10, %c0_11] : memref<8x4xf32, #tpu.memory_space<vmem>>, vector<8x4xf32>
    tpu.vector_store %arg6[%c0_10, %c0_11], %13 {strides = array<i32>} : memref<8x4xf32, #tpu.memory_space<vmem>>, vector<8x4xf32>,
    return
  }
  func.func @transform_0(%arg0: i32) -> (i32, i32) {
    %c0_i32 = arith.constant 0 : i32
    %c0_i32_0 = arith.constant 0 : i32
    return %arg0, %c0_i32 : i32, i32
  }
  func.func @transform_1(%arg0: i32) -> (i32, i32) {
    %c0_i32 = arith.constant 0 : i32
    %c0_i32_0 = arith.constant 0 : i32
    %c0_i32_1 = arith.constant 0 : i32
    return %c0_i32, %c0_i32_0 : i32, i32
  }
  func.func @transform_2(%arg0: i32) -> (i32, i32) {
    %c0_i32 = arith.constant 0 : i32
    %c0_i32_0 = arith.constant 0 : i32
    %c0_i32_1 = arith.constant 0 : i32
    return %c0_i32, %c0_i32_0 : i32, i32
  }
  func.func @transform_3(%arg0: i32) -> (i32, i32) {
    %c0_i32 = arith.constant 0 : i32
    %c0_i32_0 = arith.constant 0 : i32
    %c0_i32_1 = arith.constant 0 : i32
    return %c0_i32, %c0_i32_0 : i32, i32
  }
  func.func @transform_4(%arg0: i32) -> (i32, i32) {
    %c0_i32 = arith.constant 0 : i32
    %c0_i32_0 = arith.constant 0 : i32
    %c0_i32_1 = arith.constant 0 : i32
    return %c0_i32, %c0_i32_0 : i32, i32
  }
  func.func @transform_5(%arg0: i32) -> (i32, i32) {
    %c0_i32 = arith.constant 0 : i32
    %c0_i32_0 = arith.constant 0 : i32
    return %arg0, %c0_i32 : i32, i32
  }
}

</mosaic_0001>

<bundles_post_ra>
// kernel: tpu_custom_call.1
= control target key start
LH: loop header
LB: loop body
LE: loop exit
PB: predicated region body
PF: predicated region fallthrough
CT: control target
= control target key end

     0   :  { %v276_v0 = vmov 0.0   ;;  %vm277_vm0 = vmmov 0   ;;  %vm46_vm1 = vcmask 261120   ;;  %vm203_vm2 = vcmask 31744   ;;  %s350_s1 = inlined_call_operand.vmem [shape: bf16[32,128], index: 1, kind: input, shape index: {}]   ;;  %s351_s0 = inlined_call_operand.vmem [shape: f32[8,32], index: 0, kind: input, shape index: {}]   ;;  %s352_s3 = inlined_call_operand.vmem [shape: bf16[128,4], index: 3, kind: input, shape index: {}]   ;;  %s353_s2 = inlined_call_operand.vmem [shape: f32[1,128], index: 2, kind: input, shape index: {}]   ;;  %s354_s4 = inlined_call_operand.vmem [shape: f32[1,4], index: 4, kind: input, shape index: {}]   ;;  %s355_s5 = inlined_call_operand.vmem [shape: f32[8,4], index: 5, kind: output, shape index: {}]  }
   0x1   :  { %234 = vmatprep.subr.bf16.mxu0 %v276_v0  ;;  %v264_v1 = vld [vmem:[%s350_s1 + $0x8] sm:$0xff]   ;;  %238 = vmatprep.mubr.msk.bf16.mxu0 %vm277_vm0, %v276_v0  ;;  %v265_v2 = vld [vmem:[%s350_s1] sm:$0xff]   ;;  %v266_v4 = vld [vmem:[%s352_s3 + $0x38] sm:$0xff]  }
   0x2   :  { %242 = vmatprep.subr.bf16.mxu1 %v276_v0  ;;  %258 = vmatprep.mubr.msk.bf16.mxu1 %vm277_vm0, %v276_v0  ;;  %v21_v3 = vld [vmem:[%s351_s0] sm:$0xff]  ;;  %v267_v6 = vld [vmem:[%s352_s3 + $0x30] sm:$0xff]   ;;  %v268_v7 = vld [vmem:[%s352_s3 + $0x28] sm:$0xff]  }
   0x3   :  { %235 = vmatpush3.bf16.msra.mxu0 %v264_v1  ;;  %v22_v5 = vpack.c.bf16 %v21_v3, %v21_v3  ;;  %243 = vmatpush3.bf16.msra.mxu1 %v266_v4  ;;  %v269_v8 = vld [vmem:[%s352_s3 + $0x20] sm:$0xff]   ;;  %v270_v9 = vld [vmem:[%s352_s3 + $0x18] sm:$0xff]   ;;  %v271_v10 = vld [vmem:[%s352_s3 + $0x10] sm:$0xff]  }
   0x4   :  { %236 = vmatprep.subr.bf16.mxu0 %v276_v0  ;;  %244 = vmatprep.subr.bf16.mxu1 %v276_v0  ;;  %v272_v11 = vld [vmem:[%s352_s3 + $0x8] sm:$0xff]   ;;  %v273_v12 = vld [vmem:[%s352_s3] sm:$0xff]  }
   0x5   :  { %v209_v13 = vld [vmem:[%s353_s2] ss:$0 sm:$0xff] }
   0x6   :  { %v213_v21 = vld [vmem:[%s354_s4] ss:$0 sm:$0xff] }
   0x7   :  { %237 = vmatpush3.bf16.msra.mxu0 %v265_v2  ;;  %245 = vmatpush3.bf16.msra.mxu1 %v267_v6 }
   0x8   :  { %246 = vmatprep.subr.bf16.mxu1 %v276_v0 }
   0xa   :  { %239 = vmatmul.mubr.msk.bf16.vlgmr.msra.gmra.mxu0 %vm46_vm1, %v22_v5 }
   0xb   :  { %247 = vmatpush3.bf16.msra.mxu1 %v268_v7 }
   0xc   :  { %248 = vmatprep.subr.bf16.mxu1 %v276_v0 }
   0xf   :  { %249 = vmatpush3.bf16.msra.mxu1 %v269_v8 }
  0x10   :  { %250 = vmatprep.subr.bf16.mxu1 %v276_v0 }
  0x13   :  { %251 = vmatpush3.bf16.msra.mxu1 %v270_v9 }
  0x14   :  { %252 = vmatprep.subr.bf16.mxu1 %v276_v0 }
  0x17   :  { %253 = vmatpush3.bf16.msra.mxu1 %v271_v10 }
  0x18   :  { %254 = vmatprep.subr.bf16.mxu1 %v276_v0 }
  0x1b   :  { %255 = vmatpush3.bf16.msra.mxu1 %v272_v11 }
  0x1c   :  { %256 = vmatprep.subr.bf16.mxu1 %v276_v0 }
  0x1f   :  { %257 = vmatpush3.bf16.msra.mxu1 %v273_v12 }
  0xca   :  { %v84_v14 = vpop.f32.mrf.mxu0 }
  0xcb   :  { %v85_v15 = vadd.f32 %v209_v13, %v84_v14 }
  0xcc   :  { %v240_v16 = vpop.f32.mrf.mxu0 }
  0xcd   :  { %274 = vtanh.f32 %v85_v15 }
  0xce   :  { %v87_v17 = vpop.f32.mrf.mxu0 }
  0xd0   :  { %v241_v18 = vpop.f32.mrf.mxu0 }
  0xda   :  { %v275_v19 = vpop.eup %274 }
  0xdb   :  { %v91_v20 = vpack.c.bf16 %v275_v19, %v275_v19 }
  0xdd   :  { %259 = vmatmul.mubr.bf16.vlgmr.msra.gmra.mxu1 %v91_v20 }
 0x19d   :  { %v197_v22 = vpop.f32.mrf.mxu1 }
 0x19e   :  { %v198_v23 = vadd.f32 %v213_v21, %v197_v22 }
 0x19f   :  { %v260_v24 = vpop.f32.mrf.mxu1 }
 0x1a0   :  { %204 = vst.msk [vmem:[%s355_s5] sm:$0xff] %vm203_vm2, %v198_v23 }
 0x1a1   :  { %v200_v25 = vpop.f32.mrf.mxu1 }
 0x1a3   :  { %v261_v26 = vpop.f32.mrf.mxu1 }

</bundles_post_ra>
